<compile_context>
chip_gen: v7x
topology: tpu7x:2x2x1
jax: 0.10.0
libtpu: 0.0.40
codegen_flags: <defaults>
</compile_context>

<pallas_src>
import jax
import jax.numpy as jnp
from jax.experimental import pallas as pl
from jax.experimental.pallas import tpu as pltpu

LANES = 128      # lane width (last dim of every block)
TM_MAX = 8192    # max sublane rows per grid step (8192*128*4B = 4 MiB f32)
N_CORES = 2      # split row blocks across up to 2 TensorCores (v7x megacore)


def _make_bce_kernel(*, epsilon, tm, steps, grid_n, n_cores,
                     last_block_rows, binary_targets):
    """Builds the kernel body with all static parameters baked in."""
    partial_last = last_block_rows < tm        # ragged last row block
    has_dup_steps = n_cores * steps > grid_n   # trailing clamped steps on last core
    fold_ok = (tm % 8) == 0                    # full-vreg accumulator path

    def accumulate(out_ref, v):
        if fold_ok:
            # Layout-aligned reshape (never crosses an (8,128) tile boundary):
            # pure vreg adds, no per-step sublane (XLU) reduce.
            out_ref[...] += v.reshape(tm // 8, 8, LANES).sum(axis=0)
        else:
            # Rare path: a single block whose row count is not a multiple of 8.
            out_ref[0:1, :] += v.sum(axis=0, keepdims=True)

    def kernel(p_ref, t_ref, out_ref):
        c = pl.program_id(0)        # core (outer, "parallel") axis
        i = pl.program_id(1)        # row-block step within this core
        g = c * steps + i           # global row-block id

        @pl.when(i == 0)
        def _():
            out_ref[...] = jnp.zeros_like(out_ref)

        def body():
            # Cast after load: inputs travel over DMA in their native dtype.
            p = p_ref[...].astype(jnp.float32)
            t = t_ref[...].astype(jnp.float32)

            if binary_targets:
                # One EUP log per element; exact when t in {0, 1}.
                val = jnp.log(jnp.where(t > 0.5, p, 1.0 - p) + epsilon)
            else:
                # t*log(p+eps) + (1-t)*log(1-p+eps) == t*(lp - lq) + lq
                lq = jnp.log((1.0 - p) + epsilon)
                val = t * (jnp.log(p + epsilon) - lq) + lq

            if partial_last:
                # Only the single ragged last block needs the OOB-row mask
                # (rows past n_rows hold unspecified / stale data).
                @pl.when(g == grid_n - 1)
                def _():
                    row = jax.lax.broadcasted_iota(jnp.int32, val.shape, 0)
                    accumulate(out_ref,
                               jnp.where(row < last_block_rows, val, 0.0))

                @pl.when(g != grid_n - 1)
                def _():
                    accumulate(out_ref, val)
            else:
                accumulate(out_ref, val)

        if has_dup_steps:
            # Last core's trailing step(s) map to a clamped duplicate block:
            # DMA re-reads the last real block but contributes nothing.
            pl.when(g < grid_n)(body)
        else:
            body()

    return kernel


def bce_loss_pallas(pred_seg: jax.Array, target_seg: jax.Array,
                    epsilon: float = 1e-09,
                    binary_targets: bool = False,
                    tm_max: int = TM_MAX) -> jax.Array:
    """-mean(t*log(p+eps) + (1-t)*log(1-p+eps)), matching the PyTorch module.

    binary_targets=True is a faster single-log path, exact when every target
    is 0/1 and pred lies in [0, 1]; the default path matches the module for
    arbitrary (probabilistic) targets.
    """
    assert pred_seg.shape == target_seg.shape
    assert tm_max >= 8 and tm_max % 8 == 0
    total = int(pred_seg.size)
    assert total > 0

    n_rows = pl.cdiv(total, LANES)
    pad = n_rows * LANES - total

    # Flatten (free bitcast reshape for contiguous inputs). Only when total is
    # not a multiple of 128 do we pad the <128-element tail; the pad is
    # BCE-neutral (pred=eps, target=0 -> term == 0), so no lane mask is needed.
    # TODO(synk): the remaining tail-pad copy could be removed entirely by
    # fusing pad+reshape into the input DMA via CompilerParams(allow_input_fusion).
    def prep(x, pad_value):
        x = jnp.reshape(x, (-1,))
        if pad:
            x = jnp.pad(x, (0, pad), constant_values=pad_value)
        return jnp.reshape(x, (n_rows, LANES))

    p2 = prep(pred_seg, epsilon)
    t2 = prep(target_seg, 0.0)

    # Row-block size: whole array if it fits, else tm_max (multiple of 8).
    tm = n_rows if n_rows <= tm_max else tm_max
    grid_n = pl.cdiv(n_rows, tm)                 # number of row blocks
    n_cores = N_CORES if grid_n >= N_CORES else 1
    steps = pl.cdiv(grid_n, n_cores)             # row blocks per core
    last_block_rows = n_rows - (grid_n - 1) * tm  # valid rows in last block

    if n_cores * steps > grid_n:
        # Clamp trailing steps of the last core onto the last real block so no
        # DMA ever starts past the array; the kernel skips their accumulation.
        def row_block(c, i):
            return (jnp.minimum(c * steps + i, grid_n - 1), 0)
    else:
        def row_block(c, i):
            return (c * steps + i, 0)

    kernel = _make_bce_kernel(
        epsilon=float(epsilon), tm=tm, steps=steps, grid_n=grid_n,
        n_cores=n_cores, last_block_rows=last_block_rows,
        binary_targets=binary_targets)

    partials = pl.pallas_call(
        kernel,
        out_shape=jax.ShapeDtypeStruct((n_cores * 8, LANES), jnp.float32),
        grid_spec=pltpu.PrefetchScalarGridSpec(
            num_scalar_prefetch=0,
            grid=(n_cores, steps),
            in_specs=[
                pl.BlockSpec((tm, LANES), row_block),
                pl.BlockSpec((tm, LANES), row_block),
            ],
            out_specs=pl.BlockSpec((8, LANES), lambda c, i: (c, 0)),
        ),
        compiler_params=pltpu.CompilerParams(
            dimension_semantics=("parallel", "arbitrary"),
            vmem_limit_bytes=32 * 1024 * 1024),
    )(p2, t2)

    # Tiny epilogue: (n_cores*8, 128) lane-partials -> scalar mean.
    return -(jnp.sum(partials) / jnp.float32(total))


if __name__ == "__main__":
    keys = jax.random.split(jax.random.PRNGKey(0), 8)

    def ref_bce(p, t, eps=1e-09):
        p = p.astype(jnp.float32)
        t = t.astype(jnp.float32)
        return -jnp.mean(t * jnp.log(p + eps)
                         + (1.0 - t) * jnp.log(1.0 - p + eps))

    # Primary shape: NCHW segmentation-like, batch=2, channels=4, spatial 16x16.
    shape = (2, 4, 16, 16)
    pred = jax.nn.sigmoid(jax.random.normal(keys[0], shape, dtype=jnp.float32))
    tgt = (jax.random.uniform(keys[1], shape) > 0.5).astype(jnp.float32)
    ref = ref_bce(pred, tgt)

    loss = bce_loss_pallas(pred, tgt)                       # general 2-log path
    jax.block_until_ready(loss)
    assert jnp.allclose(loss, ref, rtol=1e-5, atol=1e-6), (loss, ref)

    loss_bin = bce_loss_pallas(pred, tgt, binary_targets=True)  # 1-log path
    jax.block_until_ready(loss_bin)
    assert jnp.allclose(loss_bin, ref, rtol=1e-5, atol=1e-6), (loss_bin, ref)

    # Ragged tail (total % 128 != 0), non-multiple-of-8 rows, soft targets.
    shape2 = (3, 5, 11, 7)
    pred2 = jax.nn.sigmoid(jax.random.normal(keys[2], shape2, dtype=jnp.float32))
    tgt2 = jax.random.uniform(keys[3], shape2)
    loss2 = bce_loss_pallas(pred2, tgt2)
    jax.block_until_ready(loss2)
    assert jnp.allclose(loss2, ref_bce(pred2, tgt2), rtol=1e-5, atol=1e-6)

    # Multi-block + two-core split + ragged last row block (small tm_max so the
    # multi-step / megacore paths are exercised at tiny sizes).
    shape3 = (77100,)
    pred3 = jax.nn.sigmoid(jax.random.normal(keys[4], shape3, dtype=jnp.float32))
    tgt3 = (jax.random.uniform(keys[5], shape3) > 0.5).astype(jnp.float32)
    loss3 = bce_loss_pallas(pred3, tgt3, tm_max=64)
    jax.block_until_ready(loss3)
    assert jnp.allclose(loss3, ref_bce(pred3, tgt3), rtol=1e-5, atol=1e-6)

    # Odd number of row blocks -> the last core gets a clamped duplicate step.
    shape4 = (73723,)
    pred4 = jax.nn.sigmoid(jax.random.normal(keys[6], shape4, dtype=jnp.float32))
    tgt4 = (jax.random.uniform(keys[7], shape4) > 0.5).astype(jnp.float32)
    loss4 = bce_loss_pallas(pred4, tgt4, tm_max=64)
    jax.block_until_ready(loss4)
    assert jnp.allclose(loss4, ref_bce(pred4, tgt4), rtol=1e-5, atol=1e-6)

    print("KERNEL_OK")
</pallas_src>

<mosaic_0001>
module attributes {stable_mosaic.version = 11 : i64} {
  func.func @kernel(%arg0: i32, %arg1: i32, %arg2: memref<16x128xf32, #tpu.memory_space<vmem>>, %arg3: memref<16x128xf32, #tpu.memory_space<vmem>>, %arg4: memref<8x128xf32, #tpu.memory_space<vmem>>) attributes {dimension_semantics = [#tpu.dimension_semantics<parallel>, #tpu.dimension_semantics<arbitrary>], iteration_bounds = array<i64: 1, 1>, scalar_prefetch = 0 : i64, scratch_operands = 0 : i64, tpu.core_type = #tpu.core_type<tc>, window_params = [{transform_indices = @transform_0, window_bounds = array<i64: 16, 128>}, {transform_indices = @transform_1, window_bounds = array<i64: 16, 128>}, {transform_indices = @transform_2, window_bounds = array<i64: 8, 128>}]} {
    %c0_i32 = arith.constant 0 : i32
    %0 = arith.cmpi eq, %arg1, %c0_i32 : i32
    %1 = arith.extui %0 : i1 to i32
    %c0_i32_0 = arith.constant 0 : i32
    %2 = arith.cmpi ne, %1, %c0_i32_0 : i32
    scf.if %2 {
      %cst_11 = arith.constant 0.000000e+00 : f32
      %21 = vector.broadcast %cst_11 : f32 to vector<8x128xf32>
      %c0_12 = arith.constant 0 : index
      %c0_13 = arith.constant 0 : index
      %22 = vector.load %arg4[%c0_12, %c0_13] : memref<8x128xf32, #tpu.memory_space<vmem>>, vector<8x128xf32>
      tpu.vector_store %arg4[%c0_12, %c0_13], %21 {strides = array<i32>} : memref<8x128xf32, #tpu.memory_space<vmem>>, vector<8x128xf32>,
    } else {
    }
    %c0 = arith.constant 0 : index
    %c0_1 = arith.constant 0 : index
    %3 = vector.load %arg2[%c0, %c0_1] : memref<16x128xf32, #tpu.memory_space<vmem>>, vector<16x128xf32>
    %c0_2 = arith.constant 0 : index
    %c0_3 = arith.constant 0 : index
    %4 = vector.load %arg3[%c0_2, %c0_3] : memref<16x128xf32, #tpu.memory_space<vmem>>, vector<16x128xf32>
    %cst = arith.constant 1.000000e+00 : f32
    %5 = vector.broadcast %cst : f32 to vector<16x128xf32>
    %6 = arith.subf %5, %3 : vector<16x128xf32>
    %cst_4 = arith.constant 9.99999971E-10 : f32
    %7 = vector.broadcast %cst_4 : f32 to vector<16x128xf32>
    %8 = arith.addf %6, %7 : vector<16x128xf32>
    %9 = math.log %8 : vector<16x128xf32>
    %cst_5 = arith.constant 9.99999971E-10 : f32
    %10 = vector.broadcast %cst_5 : f32 to vector<16x128xf32>
    %11 = arith.addf %3, %10 : vector<16x128xf32>
    %12 = math.log %11 : vector<16x128xf32>
    %13 = arith.subf %12, %9 : vector<16x128xf32>
    %14 = arith.mulf %4, %13 : vector<16x128xf32>
    %15 = arith.addf %14, %9 : vector<16x128xf32>
    %c0_6 = arith.constant 0 : index
    %c0_7 = arith.constant 0 : index
    %16 = vector.load %arg4[%c0_6, %c0_7] : memref<8x128xf32, #tpu.memory_space<vmem>>, vector<8x128xf32>
    %17 = vector.shape_cast %15 : vector<16x128xf32> to vector<2x8x128xf32>
    %cst_8 = arith.constant dense<0.000000e+00> : vector<8x128xf32>
    %18 = vector.multi_reduction <add>, %17, %cst_8 [0] : vector<2x8x128xf32> to vector<8x128xf32>
    %19 = arith.addf %16, %18 : vector<8x128xf32>
    %c0_9 = arith.constant 0 : index
    %c0_10 = arith.constant 0 : index
    %20 = vector.load %arg4[%c0_9, %c0_10] : memref<8x128xf32, #tpu.memory_space<vmem>>, vector<8x128xf32>
    tpu.vector_store %arg4[%c0_9, %c0_10], %19 {strides = array<i32>} : memref<8x128xf32, #tpu.memory_space<vmem>>, vector<8x128xf32>,
    return
  }
  func.func @transform_0(%arg0: i32, %arg1: i32) -> (i32, i32) {
    %c1_i32 = arith.constant 1 : i32
    %0 = arith.muli %arg0, %c1_i32 : i32
    %1 = arith.addi %0, %arg1 : i32
    %c0_i32 = arith.constant 0 : i32
    %c0_i32_0 = arith.constant 0 : i32
    return %1, %c0_i32 : i32, i32
  }
  func.func @transform_1(%arg0: i32, %arg1: i32) -> (i32, i32) {
    %c1_i32 = arith.constant 1 : i32
    %0 = arith.muli %arg0, %c1_i32 : i32
    %1 = arith.addi %0, %arg1 : i32
    %c0_i32 = arith.constant 0 : i32
    %c0_i32_0 = arith.constant 0 : i32
    return %1, %c0_i32 : i32, i32
  }
  func.func @transform_2(%arg0: i32, %arg1: i32) -> (i32, i32) {
    %c0_i32 = arith.constant 0 : i32
    %c0_i32_0 = arith.constant 0 : i32
    return %arg0, %c0_i32 : i32, i32
  }
}

</mosaic_0001>

<bundles_post_ra>
// kernel: tpu_custom_call.1
= control target key start
LH: loop header
LB: loop body
LE: loop exit
PB: predicated region body
PF: predicated region fallthrough
CT: control target
= control target key end

     0   :  { %7 = vsyncpa [#allocation3], 0  ;;  %s243_s0 = inlined_call_operand.hbm [shape: f32[16,128], index: 0, kind: input, shape index: {}]   ;;  %s244_s1 = inlined_call_operand.hbm [shape: f32[16,128], index: 1, kind: input, shape index: {}]   ;;  %s245_s2 = inlined_call_operand.hbm [shape: f32[8,128], index: 2, kind: output, shape index: {}]  }
   0x1   :  { %8 = vsyncpa [#allocation6], 0 }
   0x2   :  { %9 = vsyncpa [#allocation4], 0  ;;  %s187_s9 = smov [#allocation2]   ;;  %s115_s13 = scalar_lea.hbm %s243_s0, 256 }
   0x3   :  { %s19_s10 = sshll.u32 %s187_s9, 4  ;;  %p116_p0 = scmp.ne.s32.totalorder %s243_s0, %s115_s13  ;;  %s20_s10 = int_to_ptr.vmem [resolvable:$true] %s19_s10 }
   0x4   :  { %p119_p1 = scmp.lt.u32.totalorder %s115_s13, %s243_s0 }
   0x6   :  { %p121_p2 = pnand %p119_p1, %p116_p0 }
   0x8   :  { %124 = shalt.err (!%p121_p2)
}
   0x9   :  { %s125_s18 = scalar_lea.vmem %s20_s10, 256  ;;  %p130_p4 = scmp.lt.s32.totalorder %s20_s10, %s20_s10 }
   0xa   :  { %p126_p3 = scmp.ne.s32.totalorder %s20_s10, %s125_s18  ;;  %p131_p5 = scmp.lt.s32.totalorder %s125_s18, %s125_s18 }
   0xc   :  { %p132_p6 = por %p131_p5, %p130_p4 }
   0xe   :  { %p133_p7 = pnand %p132_p6, %p126_p3 }
  0x10   :  { %136 = shalt.err (!%p133_p7)
}
  0x11   :  { %s188_s19 = smov 128   ;;  %s189_s20 = smov 8  }
  0x12   :  { %25 = dma.hbm_to_vmem [thread:$0]  %s243_s0, 256, %s20_s10, [#allocation3], %s188_s19, %s188_s19, %s189_s20  }
  0x13   :  { %s190_s23 = smov [#allocation5]   ;;  %s137_s27 = scalar_lea.hbm %s244_s1, 256 }
  0x14   :  { %s35_s24 = sshll.u32 %s190_s23, 4  ;;  %p138_p8 = scmp.ne.s32.totalorder %s244_s1, %s137_s27  ;;  %s36_s24 = int_to_ptr.vmem [resolvable:$true] %s35_s24 }
  0x15   :  { %p141_p9 = scmp.lt.u32.totalorder %s137_s27, %s244_s1 }
  0x17   :  { %p143_p10 = pnand %p141_p9, %p138_p8 }
  0x19   :  { %146 = shalt.err (!%p143_p10)
}
  0x1a   :  { %s147_s4 = scalar_lea.vmem %s36_s24, 256  ;;  %p152_p12 = scmp.lt.s32.totalorder %s36_s24, %s36_s24 }
  0x1b   :  { %p148_p11 = scmp.ne.s32.totalorder %s36_s24, %s147_s4  ;;  %p153_p13 = scmp.lt.s32.totalorder %s147_s4, %s147_s4 }
  0x1d   :  { %p154_p0 = por %p153_p13, %p152_p12 }
  0x1f   :  { %p155_p1 = pnand %p154_p0, %p148_p11 }
  0x21   :  { %158 = shalt.err (!%p155_p1)
}
  0x22   :  { %41 = dma.hbm_to_vmem [thread:$0]  %s244_s1, 256, %s36_s24, [#allocation6], %s188_s19, %s188_s19, %s189_s20  }
  0x23   :  { %181 = dma.done.wait [#allocation3], 256  }
  0x24   :  { %182 = vsyncadd [#allocation3], 4294967040 }
  0x25   :  { %183 = dma.done.wait [#allocation6], 256  }
  0x26   :  { %184 = vsyncadd [#allocation6], 4294967040  ;;  %v57_v0 = vld [vmem:[#allocation2] sm:$0xff]  ;;  %v58_v1 = vld [vmem:[#allocation2 + $0x8] sm:$0xff]  ;;  %s191_s1 = smov [#allocation7]  }
  0x27   :  { %v61_v2 = vsub.f32 1.0, %v57_v0  ;;  %v62_v3 = vsub.f32 1.0, %v58_v1  ;;  %v69_v4 = vadd.f32 1e-09, %v57_v0  ;;  %v70_v5 = vadd.f32 1e-09, %v58_v1 }
  0x28   :  { %v59_v15 = vld [vmem:[#allocation5] sm:$0xff]  ;;  %v60_v17 = vld [vmem:[#allocation5 + $0x8] sm:$0xff]  ;;  %s91_s6 = sshll.u32 %s191_s1, 4  ;;  %s92_s6 = int_to_ptr.vmem [resolvable:$true] %s91_s6 }
  0x29   :  { %v63_v6 = vadd.f32 1e-09, %v61_v2  ;;  %v64_v7 = vadd.f32 1e-09, %v62_v3  ;;  %107 = vlog2.f32 %v69_v4  ;;  %s159_s7 = scalar_lea.vmem %s92_s6, 128  ;;  %p164_p3 = scmp.lt.s32.totalorder %s92_s6, %s92_s6 }
  0x2a   :  { %109 = vlog2.f32 %v70_v5  ;;  %p160_p2 = scmp.ne.s32.totalorder %s92_s6, %s159_s7  ;;  %p165_p4 = scmp.lt.s32.totalorder %s159_s7, %s159_s7 }
  0x2b   :  { %111 = vlog2.f32 %v63_v6 }
  0x2c   :  { %113 = vlog2.f32 %v64_v7  ;;  %p166_p5 = por %p165_p4, %p164_p3 }
  0x2e   :  { %p167_p6 = pnand %p166_p5, %p160_p2 }
  0x33   :  { %v108_v8 = vpop.eup %107 }
  0x34   :  { %v110_v9 = vpop.eup %109  ;;  %v72_v10 = vmul.f32 0.6931472, %v108_v8 }
  0x35   :  { %v112_v11 = vpop.eup %111  ;;  %v74_v12 = vmul.f32 0.6931472, %v110_v9 }
  0x36   :  { %v114_v13 = vpop.eup %113  ;;  %v66_v14 = vmul.f32 0.6931472, %v112_v11 }
  0x37   :  { %v68_v16 = vmul.f32 0.6931472, %v114_v13 }
  0x38   :  { %v75_v18 = vsub.f32 %v72_v10, %v66_v14 }
  0x39   :  { %v76_v19 = vsub.f32 %v74_v12, %v68_v16 }
  0x3a   :  { %v77_v20 = vmul.f32 %v75_v18, %v59_v15 }
  0x3b   :  { %v78_v21 = vmul.f32 %v76_v19, %v60_v17 }
  0x3c   :  { %v79_v22 = vadd.f32 %v77_v20, %v66_v14 }
  0x3d   :  { %v80_v23 = vadd.f32 %v78_v21, %v68_v16 }
  0x3f   :  { %v82_v24 = vadd.f32 %v80_v23, %v79_v22 }
  0x41   :  { %84 = vst [vmem:[#allocation7] sm:$0xff] %v82_v24 }
  0x42   :  { %170 = shalt.err (!%p167_p6)
}
  0x43   :  { %s171_s10 = scalar_lea.hbm %s245_s2, 128 }
  0x44   :  { %p172_p7 = scmp.ne.s32.totalorder %s245_s2, %s171_s10  ;;  %p175_p8 = scmp.lt.u32.totalorder %s171_s10, %s245_s2 }
  0x46   :  { %p177_p9 = pnand %p175_p8, %p172_p7 }
  0x48   :  { %180 = shalt.err (!%p177_p9)
}
  0x49   :  { %94 = dma.vmem_to_hbm [thread:$0]  %s92_s6, 128, %s245_s2, [#allocation4]  }
  0x4a   :  { %185 = dma.done.wait [#allocation4], 128  }
  0x4b   :  { %186 = vsyncadd [#allocation4], 4294967168 }
  0x4c   :  { %98 = vsyncpa [#allocation3], 1 }
  0x4d   :  { %99 = vsyncpa [#allocation6], 1 }
  0x4e   :  { %100 = vsyncpa [#allocation4], 1 }

</bundles_post_ra>
